<compile_context>
chip_gen: v7x
topology: tpu7x:2x2x1
jax: 0.10.0
libtpu: 0.0.40
codegen_flags: <defaults>
</compile_context>

<pallas_src>
import functools

import jax
import jax.numpy as jnp
from jax.experimental import pallas as pl
from jax.experimental.pallas import tpu as pltpu


_LANE_CHOICES = (1024, 2048, 4096, 512, 256, 128)  # preferred lane widths
_MIN_GRID = 8                 # >= 4 pipeline steps per TensorCore on v7x
_MIN_KERNEL_BYTES = 64 * 1024  # below this, pallas_call overhead dominates


def _round_up(a, b):
    return ((a + b - 1) // b) * b


@functools.lru_cache(maxsize=None)
def _hw_budget():
    """(max bytes per block buffer, vmem_limit_bytes) — generation-aware."""
    try:
        vmem_cap = int(pltpu.get_tpu_info().vmem_capacity_bytes)
    except Exception:
        vmem_cap = 64 << 20            # assume the smallest (v7x per-TC VMEM)
    if vmem_cap >= (100 << 20):        # v5e / v6e: 128 MiB VMEM
        return 16 << 20, 80 << 20
    return 8 << 20, 48 << 20           # v7x (64 MiB) or unknown


def _bit_exp_fits(bits, ebits):
    """True iff both biased scale exponents stay in [1, 254] over the clamped
    max_exp range, so the f32 exponent-field bit trick is exact."""
    lo, hi = -(2 ** (ebits - 1)), 2 ** (ebits - 1) - 1
    cands = [-m + (bits - 2) + 127 for m in (lo, hi)] + \
            [m - (bits - 2) + 127 for m in (lo, hi)]
    return all(1 <= c <= 254 for c in cands)


# ---------------------------------------------------------------------------
# Plain-XLA path (reference + tiny-tensor fallback). Exact floor(log2(|x|))
# via the exponent bit field (matches the kernel; zeros/denormals fold to the
# same clamped result as the reference's x==0 guard).
# ---------------------------------------------------------------------------
def _block_quantize_jnp(x, bits, ebits, mode, seed):
    x32 = x.astype(jnp.float32)
    xb = jax.lax.bitcast_convert_type(x32, jnp.int32)
    max_exp = (((xb >> 23) & 0xFF) - 127).astype(jnp.float32)
    max_exp = jnp.clip(max_exp, -(2.0 ** (ebits - 1)), 2.0 ** (ebits - 1) - 1)
    i = x32 * jnp.exp2(-max_exp + (bits - 2))
    if mode == "stochastic":
        r = jax.random.uniform(jax.random.PRNGKey(seed), x32.shape, jnp.float32)
        i = jnp.floor(i + r)
    else:
        i = jnp.round(i)
    i = jnp.clip(i, -(2.0 ** (bits - 1)), 2.0 ** (bits - 1) - 1)
    return (i * jnp.exp2(max_exp - (bits - 2))).astype(x.dtype)


def _block_quantize_ref(x, bits, ebits):
    return _block_quantize_jnp(x, bits, ebits, "nearest", 0)


# ---------------------------------------------------------------------------
# In-kernel math. floor(log2(|x|)) and both exp2() come from exponent-field
# bit tricks (VPU only, no EUP) when the bits/ebits range allows it.
# ---------------------------------------------------------------------------
def _block_quantize_compute(x_f32, bits, ebits, use_bit_exp, r=None):
    if use_bit_exp:
        xb = pltpu.bitcast(x_f32, jnp.int32)
        # Biased exponent field -> floor(log2(|x|)) for normals; zeros/denorms
        # give -127, which the clamp folds to the same output (0) as the
        # reference's x==0 guard.
        max_exp = ((xb >> 23) & 0xFF) - 127
        max_exp = jnp.clip(max_exp, -(2 ** (ebits - 1)), 2 ** (ebits - 1) - 1)
        scale_bits = (-max_exp + (bits - 2) + 127) << 23     # 2**(-max_exp+bits-2)
        scale = pltpu.bitcast(scale_bits, jnp.float32)
        descale = pltpu.bitcast((254 << 23) - scale_bits, jnp.float32)  # exact 1/scale
    else:
        # Rarely used (e.g. ebits >= 8): EUP exp2 path, still exact powers of 2.
        safe = jnp.where(x_f32 == 0.0, 1.0, x_f32)
        me = jnp.floor(jnp.log2(jnp.abs(safe)))
        me = jnp.clip(me, -(2.0 ** (ebits - 1)), 2.0 ** (ebits - 1) - 1)
        scale = jnp.exp2(-me + (bits - 2))
        descale = jnp.exp2(me - (bits - 2))
    i = x_f32 * scale
    if r is None:
        i = jnp.round(i)          # 'nearest' (round-half-to-even, like torch.round)
    else:
        i = jnp.floor(i + r) - 1.0  # 'stochastic'; r is uniform in [1, 2)
    i = jnp.clip(i, -(2.0 ** (bits - 1)), 2.0 ** (bits - 1) - 1)
    return i * descale


def _hash_uniform_1_2(mixed_i32):
    """splitmix/lowbias-style 32-bit finalizer -> uniform float32 in [1, 2).
    Pure VPU integer ops (no pltpu.prng_*), so it lowers on TPU and interpret."""
    h = pltpu.bitcast(mixed_i32, jnp.uint32)
    h = h ^ (h >> 16)
    h = h * jnp.uint32(0x7FEB352D)
    h = h ^ (h >> 15)
    h = h * jnp.uint32(0x846CA68B)
    h = h ^ (h >> 16)
    return pltpu.bitcast((h >> 9) | jnp.uint32(0x3F800000), jnp.float32)


def _bq_kernel_nearest(x_ref, o_ref, *, bits, ebits, use_bit_exp):
    x = x_ref[...].astype(jnp.float32)   # compute in f32 (v5e VPU has no bf16)
    o_ref[...] = _block_quantize_compute(x, bits, ebits, use_bit_exp).astype(o_ref.dtype)


def _bq_kernel_stochastic(seed_ref, x_ref, o_ref, *, bits, ebits, use_bit_exp,
                          block_elems):
    x = x_ref[...].astype(jnp.float32)
    shp = x.shape
    row_i = jax.lax.broadcasted_iota(jnp.int32, shp, 0)
    col_i = jax.lax.broadcasted_iota(jnp.int32, shp, 1)
    # Per-element counter = global element index in the slab; int32 wrap is fine.
    cnt = pl.program_id(0) * block_elems + row_i * shp[1] + col_i
    # Golden-ratio seed mix so seed=0 still decorrelates from the raw counter.
    # Note: noise is deterministic per (seed, shape); pass fresh seeds per call.
    r = _hash_uniform_1_2(cnt ^ (seed_ref[0] * (-1640531527)))
    o_ref[...] = _block_quantize_compute(x, bits, ebits, use_bit_exp, r=r).astype(o_ref.dtype)


class BlockQuantizer:
    """JAX/Pallas port of the PyTorch BlockQuantizer module (forward pass)."""

    def __init__(self, bits, ebits, mode):
        assert mode in ("nearest", "stochastic")
        self.bits = bits
        self.ebits = ebits
        self.mode = mode
        self.use_bit_exp = _bit_exp_fits(bits, ebits) if bits != -1 else True

    def __call__(self, x, seed=0):
        if self.bits == -1:
            return x

        orig_shape = x.shape
        dtype = x.dtype
        n = int(x.size)
        itemsize = jnp.dtype(dtype).itemsize

        # Tiny tensors: the fixed pallas_call / grid-step overhead dominates.
        if n * itemsize < _MIN_KERNEL_BYTES:
            return _block_quantize_jnp(x, self.bits, self.ebits, self.mode, seed)

        # ---- lane width: avoid padding whenever n is a multiple of 128 ----
        lane_w = None
        for w in _LANE_CHOICES:
            if n % w == 0:
                lane_w = w
                break
        if lane_w is None:
            lane_w = 1024                       # ragged tail: rare pad path
        rows = pl.cdiv(n, lane_w)
        n_pad = rows * lane_w

        # ---- block size: big for HBM roofline, but >= _MIN_GRID steps ----
        row_mult = max(8, 32 // max(itemsize, 1))   # f32:8, bf16:16, int8:32
        block_budget, vmem_limit = _hw_budget()
        max_block_rows = max(
            row_mult, (block_budget // (lane_w * itemsize)) // row_mult * row_mult)
        target = _round_up(pl.cdiv(rows, _MIN_GRID), row_mult)
        block_rows = max(row_mult, min(max_block_rows, target))
        grid_n = pl.cdiv(rows, block_rows)
        if grid_n > 1 and grid_n % 2 == 1:
            # Even step count so the "parallel" axis balances v7x's two TCs.
            alt = max(row_mult, _round_up(pl.cdiv(rows, grid_n + 1), row_mult))
            if pl.cdiv(rows, alt) % 2 == 0:
                block_rows = alt
                grid_n = pl.cdiv(rows, alt)
        grid = (grid_n,)

        xf = x.reshape(-1)
        if n_pad != n:
            xf = jnp.pad(xf, (0, n_pad - n))    # only for n not multiple of 128
        x2d = xf.reshape(rows, lane_w)

        idx_map = lambda i, *_: (i, 0)          # *_ absorbs scalar-prefetch refs
        blk = pl.BlockSpec((block_rows, lane_w), idx_map)
        out_shape = jax.ShapeDtypeStruct((rows, lane_w), dtype)
        cparams = pltpu.CompilerParams(
            dimension_semantics=("parallel",),
            vmem_limit_bytes=vmem_limit,
        )
        flops_per = 14 if self.mode == "nearest" else 28
        cost = pl.CostEstimate(
            flops=flops_per * n_pad,
            transcendentals=0 if self.use_bit_exp else 2 * n_pad,
            bytes_accessed=2 * n_pad * itemsize,
        )

        if self.mode == "nearest":
            kern = functools.partial(_bq_kernel_nearest, bits=self.bits,
                                     ebits=self.ebits, use_bit_exp=self.use_bit_exp)
            out = pl.pallas_call(
                kern,
                out_shape=out_shape,
                grid_spec=pltpu.PrefetchScalarGridSpec(
                    num_scalar_prefetch=0, grid=grid,
                    in_specs=[blk], out_specs=blk),
                compiler_params=cparams,
                cost_estimate=cost,
            )(x2d)
        else:  # stochastic
            # TODO(synk): switch to the HW PRNG (pltpu.prng_random_bits) when a
            # native-TPU-only build is guaranteed; the hash PRNG is portable.
            kern = functools.partial(_bq_kernel_stochastic, bits=self.bits,
                                     ebits=self.ebits, use_bit_exp=self.use_bit_exp,
                                     block_elems=block_rows * lane_w)
            seed_arr = jnp.full((1,), seed, dtype=jnp.int32)
            out = pl.pallas_call(
                kern,
                out_shape=out_shape,
                grid_spec=pltpu.PrefetchScalarGridSpec(
                    num_scalar_prefetch=1, grid=grid,
                    in_specs=[blk], out_specs=blk),
                compiler_params=cparams,
                cost_estimate=cost,
            )(seed_arr, x2d)

        if n_pad != n:
            return out.reshape(-1)[:n].reshape(orig_shape)
        return out.reshape(orig_shape)


if __name__ == "__main__":
    bits, ebits = 8, 4
    q_nearest = BlockQuantizer(bits, ebits, "nearest")

    # Small NCHW input (takes the fused pure-XLA fallback for tiny tensors).
    x_small = jax.random.normal(jax.random.PRNGKey(0), (2, 4, 16, 16), jnp.float32)
    y_small = jax.block_until_ready(q_nearest(x_small))
    assert y_small.shape == x_small.shape and y_small.dtype == x_small.dtype
    assert jnp.allclose(y_small, _block_quantize_ref(x_small, bits, ebits),
                        rtol=1e-5, atol=1e-6)

    # Activation-sized input: exercises the Pallas kernel, grid > 1, the
    # zero-copy (no-pad) path and the even, megacore-friendly grid.
    x_big = jax.random.normal(jax.random.PRNGKey(1), (2, 8, 64, 64), jnp.float32)
    y_big = jax.block_until_ready(q_nearest(x_big))
    assert jnp.allclose(y_big, _block_quantize_ref(x_big, bits, ebits),
                        rtol=1e-5, atol=1e-6), "mismatch (no-pad kernel path)"

    # Ragged element count (not a multiple of 128): masked partial block + pad.
    x_ragged = jax.random.normal(jax.random.PRNGKey(2), (2, 5, 33, 65), jnp.float32)
    y_ragged = jax.block_until_ready(q_nearest(x_ragged))
    assert y_ragged.shape == x_ragged.shape
    assert jnp.allclose(y_ragged, _block_quantize_ref(x_ragged, bits, ebits),
                        rtol=1e-5, atol=1e-6), "mismatch (pad kernel path)"

    # bf16 input through the kernel (row_mult=16 tiling).
    x_bf16 = x_big.astype(jnp.bfloat16)
    y_bf16 = jax.block_until_ready(q_nearest(x_bf16))
    ref_bf16 = _block_quantize_ref(x_bf16.astype(jnp.float32), bits, ebits
                                   ).astype(jnp.bfloat16)
    assert y_bf16.dtype == jnp.bfloat16
    assert jnp.allclose(y_bf16.astype(jnp.float32), ref_bf16.astype(jnp.float32),
                        rtol=1e-2, atol=1e-2), "mismatch (bf16 kernel path)"

    # Stochastic mode through the Pallas kernel (in-kernel hash PRNG).
    q_sto = BlockQuantizer(bits, ebits, "stochastic")
    y_sto = jax.block_until_ready(q_sto(x_big, seed=123))
    assert y_sto.shape == x_big.shape and y_sto.dtype == x_big.dtype
    assert bool(jnp.all(jnp.isfinite(y_sto)))
    # Sanity: stochastic result stays within ~2 quantization steps of the input.
    xb = jax.lax.bitcast_convert_type(x_big, jnp.int32)
    me = jnp.clip((((xb >> 23) & 0xFF) - 127).astype(jnp.float32),
                  -(2.0 ** (ebits - 1)), 2.0 ** (ebits - 1) - 1)
    step = jnp.exp2(me - (bits - 2))
    assert bool(jnp.all(jnp.abs(y_sto - x_big) <= 2.0 * step + 1e-6))

    print("KERNEL_OK")
</pallas_src>

<mosaic_0001>
module attributes {stable_mosaic.version = 11 : i64} {
  func.func @_bq_kernel_nearest(%arg0: i32, %arg1: memref<8x1024xf32, #tpu.memory_space<vmem>>, %arg2: memref<8x1024xf32, #tpu.memory_space<vmem>>) attributes {dimension_semantics = [#tpu.dimension_semantics<parallel>], iteration_bounds = array<i64: 8>, scalar_prefetch = 0 : i64, scratch_operands = 0 : i64, tpu.core_type = #tpu.core_type<tc>, window_params = [{transform_indices = @transform_0, window_bounds = array<i64: 8, 1024>}, {transform_indices = @transform_1, window_bounds = array<i64: 8, 1024>}]} {
    %c0 = arith.constant 0 : index
    %c0_0 = arith.constant 0 : index
    %0 = vector.load %arg1[%c0, %c0_0] : memref<8x1024xf32, #tpu.memory_space<vmem>>, vector<8x1024xf32>
    %1 = tpu.bitcast %0 : vector<8x1024xf32> -> vector<8x1024xi32>
    %c23_i32 = arith.constant 23 : i32
    %2 = vector.broadcast %c23_i32 : i32 to vector<8x1024xi32>
    %3 = arith.shrsi %1, %2 : vector<8x1024xi32>
    %c255_i32 = arith.constant 255 : i32
    %4 = vector.broadcast %c255_i32 : i32 to vector<8x1024xi32>
    %5 = arith.andi %3, %4 : vector<8x1024xi32>
    %c127_i32 = arith.constant 127 : i32
    %6 = vector.broadcast %c127_i32 : i32 to vector<8x1024xi32>
    %7 = arith.subi %5, %6 : vector<8x1024xi32>
    %c-8_i32 = arith.constant -8 : i32
    %c7_i32 = arith.constant 7 : i32
    %8 = vector.broadcast %c-8_i32 : i32 to vector<8x1024xi32>
    %9 = arith.maxsi %8, %7 : vector<8x1024xi32>
    %10 = vector.broadcast %c7_i32 : i32 to vector<8x1024xi32>
    %11 = arith.minsi %10, %9 : vector<8x1024xi32>
    %c0_i32 = arith.constant 0 : i32
    %12 = vector.broadcast %c0_i32 : i32 to vector<8x1024xi32>
    %13 = arith.subi %12, %11 : vector<8x1024xi32>
    %c6_i32 = arith.constant 6 : i32
    %14 = vector.broadcast %c6_i32 : i32 to vector<8x1024xi32>
    %15 = arith.addi %13, %14 : vector<8x1024xi32>
    %c127_i32_1 = arith.constant 127 : i32
    %16 = vector.broadcast %c127_i32_1 : i32 to vector<8x1024xi32>
    %17 = arith.addi %15, %16 : vector<8x1024xi32>
    %c23_i32_2 = arith.constant 23 : i32
    %18 = vector.broadcast %c23_i32_2 : i32 to vector<8x1024xi32>
    %19 = arith.shli %17, %18 : vector<8x1024xi32>
    %20 = tpu.bitcast %19 : vector<8x1024xi32> -> vector<8x1024xf32>
    %c2130706432_i32 = arith.constant 2130706432 : i32
    %21 = vector.broadcast %c2130706432_i32 : i32 to vector<8x1024xi32>
    %22 = arith.subi %21, %19 : vector<8x1024xi32>
    %23 = tpu.bitcast %22 : vector<8x1024xi32> -> vector<8x1024xf32>
    %24 = arith.mulf %0, %20 : vector<8x1024xf32>
    %25 = math.roundeven %24 : vector<8x1024xf32>
    %cst = arith.constant -1.280000e+02 : f32
    %cst_3 = arith.constant 1.270000e+02 : f32
    %26 = vector.broadcast %cst : f32 to vector<8x1024xf32>
    %27 = arith.maximumf %26, %25 : vector<8x1024xf32>
    %28 = vector.broadcast %cst_3 : f32 to vector<8x1024xf32>
    %29 = arith.minimumf %28, %27 : vector<8x1024xf32>
    %30 = arith.mulf %29, %23 : vector<8x1024xf32>
    %c0_4 = arith.constant 0 : index
    %c0_5 = arith.constant 0 : index
    %31 = vector.load %arg2[%c0_4, %c0_5] : memref<8x1024xf32, #tpu.memory_space<vmem>>, vector<8x1024xf32>
    tpu.vector_store %arg2[%c0_4, %c0_5], %30 {strides = array<i32>} : memref<8x1024xf32, #tpu.memory_space<vmem>>, vector<8x1024xf32>,
    return
  }
  func.func @transform_0(%arg0: i32) -> (i32, i32) {
    %c0_i32 = arith.constant 0 : i32
    %c0_i32_0 = arith.constant 0 : i32
    return %arg0, %c0_i32 : i32, i32
  }
  func.func @transform_1(%arg0: i32) -> (i32, i32) {
    %c0_i32 = arith.constant 0 : i32
    %c0_i32_0 = arith.constant 0 : i32
    return %arg0, %c0_i32 : i32, i32
  }
}

</mosaic_0001>

<bundles_post_ra>
// kernel: tpu_custom_call.1
= control target key start
LH: loop header
LB: loop body
LE: loop exit
PB: predicated region body
PF: predicated region fallthrough
CT: control target
= control target key end

     0   :  { %6 = vsyncpa [#allocation3], 0  ;;  %s791_s0 = inlined_call_operand.hbm [shape: f32[64,1024], index: 0, kind: input, shape index: {}]   ;;  %s792_s1 = inlined_call_operand.hbm [shape: f32[64,1024], index: 1, kind: output, shape index: {}]  }
   0x1   :  { %8 = vsyncpa [#allocation3 + $0x1], 0 }
   0x2   :  { %9 = vsyncpa [#allocation4], 0 }
   0x3   :  { %11 = vsyncpa [#allocation4 + $0x1], 0  ;;  %s582_s6 = smov 0   ;;  %s584_s7 = smov 0  }
   0x4   :  { %s586_s8 = smov 0   ;;  %s588_s9 = smov 0  }
   0x5 LB: > { %s603_s10 = sadd.s32 4294967295, %s568_s9   ;;  %s394_s11 = sadd.s32 4294967294, %s568_s9   ;;  %s568_s9 = sphi %s588_s9, %s806_s9   ;;  %s564_s8 = sphi %s586_s8, %s805_s8   ;;  %s560_s7 = sphi %s584_s7, %s804_s7   ;;  %s556_s6 = sphi %s582_s6, %s803_s6  }
   0x6   : > { %s607_s12 = sadd.s32 1, %s568_s9   ;;  %s24_s13 = sadd.s32 1, %s564_s8 }
   0x7   : > { %s21_s14 = ssub.s32 %s568_s9, %s607_s12  ;;  %p31_p0 = scmp.ne.s32.totalorder %s564_s8, %s560_s7 }
   0x8   : > { %p22_p1 = scmp.eq.s32.totalorder %s21_s14, 0  ;;  %p32_p2 = scmp.eq.s32.totalorder %s568_s9, 0 }
   0x9   : > { %p37_p3 = scmp.ne.s32.totalorder %s560_s7, %s556_s6  ;;  %p38_p4 = scmp.eq.s32.totalorder %s603_s10, 0 }
   0xa   : > { %s619_s15 = scalar_select %p22_p1, %s564_s8, %s24_s13  }
   0xb   : > { %p621_p5 = por %p32_p2, %p31_p0  ;;  %p625_p6 = por %p38_p4, %p37_p3 }
   0xc   : > { %p61_p7 = scmp.eq.s32.totalorder %s603_s10, 7  ;;  %p67_p8 = scmp.eq.s32.totalorder %s394_s11, 7 }
   0xd   : > { %p438_p9 = scmp.lt.s32.totalorder %s568_s9, 8  ;;  %s87_s20 = sand.u32 1, %s564_s8  }
   0xe   : > { %p631_p10 = por %p61_p7, %p31_p0  ;;  %p635_p11 = por %p67_p8, %p37_p3 }
   0xf   : > { %s416_s21 = sshll.u32 %s568_s9, 10  ;;  %s397_s22 = sshll.u32 %s87_s20, 6 }
  0x10   : > { %s796_s18 = scalar_select %p631_p10, 1, 0 }
  0x11   : > { %s797_s19 = scalar_select %p635_p11, 1, 0 }
  0x12   : > { %s644_s25 = scalar_lea.hbm %s791_s0, %s416_s21  ;;  %s91_s26 = scalar_lea.vmem [#allocation2], %s397_s22 }
  0x13   : > { %s99_s27 = sshll.u32 %s91_s26, 4  ;;  %p648_p12 = pnand %p438_p9, %p621_p5  ;;  %s652_s27 = int_to_ptr.vmem [resolvable:$true] %s99_s27 }
  0x14   : > { %s88_s29 = scalar_lea.sflag [#allocation3], %s87_s20  ;;  %s472_s30 = scalar_lea.hbm %s644_s25, 1024 }
  0x15   : > { %p473_p1 = scmp.ne.s32.totalorder %s644_s25, %s472_s30  ;;  %p474_p2 = pneg %p648_p12 }
  0x16   : > { %s477_s4 = scalar_lea.hbm %s791_s0, 8192  ;;  %p478_p5 = scmp.lt.u32.totalorder %s644_s25, %s791_s0 }
  0x17   : > { %p475_p3 = pnand %p474_p2, %p473_p1  ;;  %p479_p7 = scmp.lt.u32.totalorder %s477_s4, %s472_s30 }
  0x18   : > { %p481_p9 = scmp.lt.u32.totalorder %s472_s30, %s644_s25 }
  0x19   : > { %p476_p4 = pneg %p475_p3  ;;  %p480_p8 = por %p479_p7, %p478_p5 }
  0x1b   : > { %p482_p13 = por %p481_p9, %p480_p8 }
  0x1d   : > { %p483_p0 = pnand %p482_p13, %p476_p4 }
  0x1f   : > { %486 = shalt.err (!%p483_p0)
}
  0x20   : > { %s487_s13 = scalar_lea.vmem %s652_s27, 1024  ;;  %s570_s14 = smov [#allocation2]  }
  0x21   : > { %p488_p1 = scmp.ne.s32.totalorder %s652_s27, %s487_s13  ;;  %s492_s16 = sshll.u32 %s570_s14, 4  ;;  %s493_s16 = int_to_ptr.vmem [resolvable:$false] %s492_s16 }
  0x22   : > { %s494_s20 = scalar_lea.vmem %s493_s16, 2048  ;;  %p495_p10 = scmp.lt.s32.totalorder %s652_s27, %s493_s16 }
  0x23   : > { %p490_p3 = pnand %p488_p1, %p474_p2  ;;  %p496_p5 = scmp.lt.s32.totalorder %s494_s20, %s487_s13 }
  0x25   : > { %p491_p11 = pneg %p490_p3  ;;  %p497_p7 = por %p496_p5, %p495_p10 }
  0x27   : > { %p498_p8 = pnand %p497_p7, %p491_p11 }
  0x29   : > { %501 = shalt.err (!%p498_p8)
}
  0x2a   : > { %433 = dma.hbm_to_vmem [thread:$0]  (!%p648_p12), %s644_s25, 1024, %s652_s27, %s88_s29  }
  0x2b   : > { %p799_p13 = scmp.lt.s32.totalorder %s568_s9, 9  ;;  %p800_p0 = scmp.ge.s32.totalorder %s568_s9, 1 }
  0x2d   : > { %p105_p2 = pnand %p800_p0, %p799_p13 }
  0x2e   : > { %s686_s21 = sand.u32 (!%p105_p2), 1, %s560_s7  }
  0x2f   : > { %108 = sbr.rel (%p105_p2) target bundleno = 118 (0x76), region = 24  ;;  %s401_s22 = sshll.u32 (!%p105_p2), %s686_s21, 6 }
  0x30   : > { %s111_s23 = scalar_lea.sflag (!%p105_p2), [#allocation3], %s686_s21  ;;  %s114_s24 = scalar_lea.vmem (!%p105_p2), [#allocation2], %s401_s22 }
  0x36   : > { %547 = dma.done.wait (%p625_p6), %s111_s23, 1024  }
  0x37   : > { %549 = vsyncadd (%p625_p6), %s111_s23, 4294966272  ;;  %v696_v0 = vld [vmem:[%s114_s24] sm:$0xff]  ;;  %v698_v1 = vld [vmem:[%s114_s24 + $0x8] sm:$0xff]  ;;  %s731_s17 = scalar_lea.vmem [#allocation5], %s401_s22  ;;  %s417_s25 = sshll.u32 %s603_s10, 10 }
  0x38   : > { %v700_v2 = vld [vmem:[%s114_s24 + $0x10] sm:$0xff]  ;;  %v149_v3 = vshra.s32 %v696_v0, 23  ;;  %v150_v4 = vshra.s32 %v698_v1, 23  ;;  %v705_v6 = vld [vmem:[%s114_s24 + $0x18] sm:$0xff]  ;;  %v707_v7 = vld [vmem:[%s114_s24 + $0x20] sm:$0xff]  ;;  %s324_s26 = sshll.u32 %s731_s17, 4  ;;  %s747_s29 = scalar_lea.hbm %s792_s1, %s417_s25  ;;  %s749_s26 = int_to_ptr.vmem [resolvable:$true] %s324_s26 }
  0x39   : > { %v151_v5 = vshra.s32 %v700_v2, 23  ;;  %v709_v8 = vld [vmem:[%s114_s24 + $0x28] sm:$0xff]  ;;  %v152_v9 = vshra.s32 %v705_v6, 23  ;;  %v153_v10 = vshra.s32 %v707_v7, 23  ;;  %v714_v12 = vld [vmem:[%s114_s24 + $0x30] sm:$0xff]  ;;  %v716_v13 = vld [vmem:[%s114_s24 + $0x38] sm:$0xff] }
  0x3a   : > { %v154_v11 = vshra.s32 %v709_v8, 23  ;;  %v157_v14 = vand.u32 255, %v149_v3  ;;  %v158_v15 = vand.u32 255, %v150_v4  ;;  %v155_v17 = vshra.s32 %v714_v12, 23  ;;  %s310_s30 = scalar_lea.sflag [#allocation4], %s686_s21  ;;  %s502_s2 = scalar_lea.vmem %s749_s26, 1024 }
  0x3b   : > { %v159_v16 = vand.u32 255, %v151_v5  ;;  %v160_v18 = vand.u32 255, %v152_v9  ;;  %v161_v19 = vand.u32 255, %v153_v10  ;;  %v156_v21 = vshra.s32 %v716_v13, 23  ;;  %p503_p6 = scmp.ne.s32.totalorder %s749_s26, %s502_s2  ;;  %p801_p10 = scmp.ne.s32.totalorder %s796_s18, 0 }
  0x3c   : > { %v162_v20 = vand.u32 255, %v154_v11  ;;  %v403_v22 = vadd.s32 4294967169, %v157_v14  ;;  %v404_v23 = vadd.s32 4294967169, %v158_v15  ;;  %v163_v25 = vand.u32 255, %v155_v17  ;;  %s571_s10 = smov [#allocation5]  }
  0x3d   : > { %v405_v24 = vadd.s32 4294967169, %v159_v16  ;;  %v406_v26 = vadd.s32 4294967169, %v160_v18  ;;  %v407_v27 = vadd.s32 4294967169, %v161_v19  ;;  %v720_v29 = vand.u32 255, %v156_v21  ;;  %p504_p11 = pnand %p503_p6, %p801_p10  ;;  %s506_s3 = sshll.u32 %s571_s10, 4  ;;  %s507_s3 = int_to_ptr.vmem [resolvable:$false] %s506_s3 }
  0x3e   : > { %v408_v28 = vadd.s32 4294967169, %v162_v20  ;;  %vm173_vm0 = vcmp.gt.s32.totalorder %v403_v22, 4294967288  ;;  %vm175_vm1 = vcmp.gt.s32.totalorder %v404_v23, 4294967288  ;;  %v409_v30 = vadd.s32 4294967169, %v163_v25  ;;  %s508_s4 = scalar_lea.vmem %s507_s3, 2048  ;;  %p509_p4 = scmp.lt.s32.totalorder %s749_s26, %s507_s3 }
  0x3f   : > { %vm177_vm2 = vcmp.gt.s32.totalorder %v405_v24, 4294967288  ;;  %v174_v31 = vsel %vm173_vm0, %v403_v22, 4294967288  ;;  %v176_v32 = vsel %vm175_vm1, %v404_v23, 4294967288  ;;  %vm179_vm3 = vcmp.gt.s32.totalorder %v406_v26, 4294967288  ;;  %p505_p12 = pneg %p504_p11  ;;  %p510_p9 = scmp.lt.s32.totalorder %s508_s4, %s502_s2 }
  0x40   : > { %v178_v33 = vsel %vm177_vm2, %v405_v24, 4294967288  ;;  %vm189_vm4 = vcmp.lt.s32.totalorder %v174_v31, 7  ;;  %vm191_vm5 = vcmp.lt.s32.totalorder %v176_v32, 7  ;;  %v180_v34 = vsel %vm179_vm3, %v406_v26, 4294967288 }
  0x41   : > { %vm193_vm6 = vcmp.lt.s32.totalorder %v178_v33, 7  ;;  %v190_v35 = vsel %vm189_vm4, %v174_v31, 7  ;;  %v192_v36 = vsel %vm191_vm5, %v176_v32, 7  ;;  %vm195_vm7 = vcmp.lt.s32.totalorder %v180_v34, 7  ;;  %p511_p1 = por %p510_p9, %p509_p4 }
  0x42   : > { %v194_v37 = vsel %vm193_vm6, %v178_v33, 7  ;;  %v205_v38 = vsub.s32 0, %v190_v35  ;;  %v206_v39 = vsub.s32 0, %v192_v36  ;;  %v196_v41 = vsel %vm195_vm7, %v180_v34, 7 }
  0x43   : > { %v207_v40 = vsub.s32 0, %v194_v37  ;;  %v208_v42 = vsub.s32 0, %v196_v41  ;;  %vm181_vm8 = vcmp.gt.s32.totalorder %v407_v27, 4294967288  ;;  %vm183_vm9 = vcmp.gt.s32.totalorder %v408_v28, 4294967288  ;;  %p512_p3 = pnand %p511_p1, %p505_p12 }
  0x44   : > { %vm185_vm10 = vcmp.gt.s32.totalorder %v409_v30, 4294967288  ;;  %v213_v43 = vadd.s32 6, %v205_v38  ;;  %v214_v44 = vadd.s32 6, %v206_v39  ;;  %v182_v46 = vsel %vm181_vm8, %v407_v27, 4294967288 }
  0x45   : > { %v215_v45 = vadd.s32 6, %v207_v40  ;;  %v216_v47 = vadd.s32 6, %v208_v42  ;;  %vm197_vm11 = vcmp.lt.s32.totalorder %v182_v46, 7  ;;  %v184_v48 = vsel %vm183_vm9, %v408_v28, 4294967288 }
  0x46   : > { %v186_v49 = vsel %vm185_vm10, %v409_v30, 4294967288  ;;  %v221_v50 = vadd.s32 127, %v213_v43  ;;  %v222_v51 = vadd.s32 127, %v214_v44  ;;  %v198_v53 = vsel %vm197_vm11, %v182_v46, 7 }
  0x47   : > { %v223_v52 = vadd.s32 127, %v215_v45  ;;  %v224_v54 = vadd.s32 127, %v216_v47  ;;  %v209_v55 = vsub.s32 0, %v198_v53  ;;  %vm199_vm12 = vcmp.lt.s32.totalorder %v184_v48, 7 }
  0x48   : > { %vm201_vm13 = vcmp.lt.s32.totalorder %v186_v49, 7  ;;  %v229_v56 = vshll.u32 %v221_v50, 23  ;;  %v230_v57 = vshll.u32 %v222_v51, 23  ;;  %v200_v59 = vsel %vm199_vm12, %v184_v48, 7 }
  0x49   : > { %v231_v58 = vshll.u32 %v223_v52, 23  ;;  %v232_v60 = vshll.u32 %v224_v54, 23  ;;  %v217_v61 = vadd.s32 6, %v209_v55  ;;  %v210_v62 = vsub.s32 0, %v200_v59 }
  0x4a   : > { %v202_v63 = vsel %vm201_vm13, %v186_v49, 7  ;;  %v245_v3 = vsub.s32 2130706432, %v229_v56  ;;  %v261_v4 = vmul.f32 %v229_v56, %v696_v0  ;;  %v246_v5 = vsub.s32 2130706432, %v230_v57 }
  0x4b   : > { %v262_v9 = vmul.f32 %v230_v57, %v698_v1  ;;  %v247_v10 = vsub.s32 2130706432, %v231_v58  ;;  %v263_v11 = vmul.f32 %v231_v58, %v700_v2  ;;  %v248_v14 = vsub.s32 2130706432, %v232_v60 }
  0x4c   : > { %v264_v15 = vmul.f32 %v232_v60, %v705_v6  ;;  %v418_v16 = vround.rtne.f32 %v261_v4  ;;  %v225_v18 = vadd.s32 127, %v217_v61  ;;  %v218_v19 = vadd.s32 6, %v210_v62 }
  0x4d   : > { %v419_v17 = vround.rtne.f32 %v262_v9  ;;  %v420_v20 = vround.rtne.f32 %v263_v11  ;;  %v211_v22 = vsub.s32 0, %v202_v63  ;;  %v410_v23 = vadd.s32 4294967169, %v720_v29 }
  0x4e   : > { %v421_v21 = vround.rtne.f32 %v264_v15  ;;  %v277_v24 = vmax.f32 %v418_v16, -128.0  ;;  %v233_v25 = vshll.u32 %v225_v18, 23  ;;  %v226_v26 = vadd.s32 127, %v218_v19 }
  0x4f   : > { %v278_v0 = vmax.f32 %v419_v17, -128.0  ;;  %v279_v1 = vmax.f32 %v420_v20, -128.0  ;;  %v219_v28 = vadd.s32 6, %v211_v22  ;;  %vm187_vm14 = vcmp.gt.s32.totalorder %v410_v23, 4294967288 }
  0x50   : > { %v280_v27 = vmax.f32 %v421_v21, -128.0  ;;  %v285_v2 = vmin.f32 %v277_v24, 127.0  ;;  %v265_v30 = vmul.f32 %v233_v25, %v707_v7  ;;  %v234_v33 = vshll.u32 %v226_v26, 23 }
  0x51   : > { %v286_v6 = vmin.f32 %v278_v0, 127.0  ;;  %v287_v31 = vmin.f32 %v279_v1, 127.0  ;;  %v227_v34 = vadd.s32 127, %v219_v28  ;;  %v188_v37 = vsel %vm187_vm14, %v410_v23, 4294967288 }
  0x52   : > { %v288_v32 = vmin.f32 %v280_v27, 127.0  ;;  %v293_v35 = vmul.f32 %v285_v2, %v245_v3  ;;  %v422_v29 = vround.rtne.f32 %v265_v30  ;;  %v266_v40 = vmul.f32 %v234_v33, %v709_v8 }
  0x53   : > { %v294_v36 = vmul.f32 %v286_v6, %v246_v5  ;;  %v295_v38 = vmul.f32 %v287_v31, %v247_v10  ;;  %v249_v7 = vsub.s32 2130706432, %v233_v25  ;;  %v235_v42 = vshll.u32 %v227_v34, 23 }
  0x54   : > { %v296_v39 = vmul.f32 %v288_v32, %v248_v14  ;;  %301 = vst [vmem:[%s731_s17] sm:$0xff] %v293_v35  ;;  %v281_v41 = vmax.f32 %v422_v29, -128.0  ;;  %vm203_vm15 = vcmp.lt.s32.totalorder %v188_v37, 7  ;;  %v423_v43 = vround.rtne.f32 %v266_v40 }
  0x55   : > { %302 = vst [vmem:[%s731_s17 + $0x8] sm:$0xff] %v294_v36  ;;  %303 = vst [vmem:[%s731_s17 + $0x10] sm:$0xff] %v295_v38  ;;  %v204_v44 = vsel %vm203_vm15, %v188_v37, 7  ;;  %v267_v8 = vmul.f32 %v235_v42, %v714_v12  ;;  %v250_v47 = vsub.s32 2130706432, %v234_v33  ;;  %v251_v53 = vsub.s32 2130706432, %v235_v42 }
  0x56   : > { %304 = vst [vmem:[%s731_s17 + $0x18] sm:$0xff] %v296_v39  ;;  %v289_v45 = vmin.f32 %v281_v41, 127.0  ;;  %v212_v46 = vsub.s32 0, %v204_v44  ;;  %v282_v48 = vmax.f32 %v423_v43, -128.0 }
  0x57   : > { %v424_v50 = vround.rtne.f32 %v267_v8 }
  0x58   : > { %v297_v49 = vmul.f32 %v289_v45, %v249_v7  ;;  %v220_v51 = vadd.s32 6, %v212_v46  ;;  %v290_v52 = vmin.f32 %v282_v48, 127.0 }
  0x59   : > { %v283_v54 = vmax.f32 %v424_v50, -128.0 }
  0x5a   : > { %305 = vst [vmem:[%s731_s17 + $0x20] sm:$0xff] %v297_v49  ;;  %v228_v55 = vadd.s32 127, %v220_v51  ;;  %v298_v56 = vmul.f32 %v290_v52, %v250_v47 }
  0x5b   : > { %v291_v57 = vmin.f32 %v283_v54, 127.0 }
  0x5c   : > { %v236_v58 = vshll.u32 %v228_v55, 23  ;;  %306 = vst [vmem:[%s731_s17 + $0x28] sm:$0xff] %v298_v56 }
  0x5d   : > { %v299_v12 = vmul.f32 %v291_v57, %v251_v53 }
  0x5e   : > { %v268_v59 = vmul.f32 %v236_v58, %v716_v13  ;;  %v252_v61 = vsub.s32 2130706432, %v236_v58 }
  0x5f   : > { %307 = vst [vmem:[%s731_s17 + $0x30] sm:$0xff] %v299_v12 }
  0x60   : > { %v425_v60 = vround.rtne.f32 %v268_v59 }
  0x62   : > { %v284_v62 = vmax.f32 %v425_v60, -128.0 }
  0x64   : > { %v292_v63 = vmin.f32 %v284_v62, 127.0 }
  0x66   : > { %v300_v3 = vmul.f32 %v292_v63, %v252_v61 }
  0x68   : > { %308 = vst [vmem:[%s731_s17 + $0x38] sm:$0xff] %v300_v3 }
  0x69   : > { %515 = shalt.err (!%p512_p3)
}
  0x6a   : > { %s516_s5 = scalar_lea.hbm %s747_s29, 1024  ;;  %s520_s14 = scalar_lea.hbm %s792_s1, 8192 }
  0x6b   : > { %p517_p5 = scmp.ne.s32.totalorder %s747_s29, %s516_s5  ;;  %p521_p13 = scmp.lt.u32.totalorder %s747_s29, %s792_s1 }
  0x6c   : > { %p522_p0 = scmp.lt.u32.totalorder %s520_s14, %s516_s5  ;;  %p524_p6 = scmp.lt.u32.totalorder %s516_s5, %s747_s29 }
  0x6d   : > { %p518_p7 = pnand %p517_p5, %p801_p10 }
  0x6e   : > { %p523_p2 = por %p522_p0, %p521_p13 }
  0x6f   : > { %p519_p8 = pneg %p518_p7 }
  0x70   : > { %p525_p11 = por %p524_p6, %p523_p2 }
  0x72   : > { %p526_p12 = pnand %p525_p11, %p519_p8 }
  0x74   : > { %529 = shalt.err (!%p526_p12)
}
  0x75   : > { %428 = dma.vmem_to_hbm [thread:$0]  (%p801_p10), %s749_s26, 1024, %s747_s29, %s310_s30  }
  0x76 PF: > { %p439_p4 = scmp.ge.s32.totalorder %s568_s9, 2  ;;  %s336_s21 = sand.u32 1, %s556_s6  }
  0x77   : > { %p802_p9 = scmp.ne.s32.totalorder %s797_s19, 0  ;;  %s337_s22 = scalar_lea.sflag [#allocation4], %s336_s21 }
  0x79   : > { %p435_p1 = pnand %p439_p4, %p802_p9 }
  0x7b   : > { %551 = dma.done.wait (!%p435_p1), %s337_s22, 1024  }
  0x7c   : > { %553 = vsyncadd (!%p435_p1), %s337_s22, 4294966272  ;;  %p14_p3 = scmp.ge.s32.totalorder %s607_s12, 10   ;;  %s803_s6 = smov %s560_s7 }
  0x7d   : > { %s804_s7 = smov %s564_s8  ;;  %s805_s8 = smov %s619_s15 }
  0x7e   : > { %s806_s9 = smov %s607_s12  ;;  %16 = sbr.rel (!%p14_p3) target bundleno = 5 (0x5), region = 69 }
  0x85   :  { %342 = vsyncpa [#allocation3], 1 }
  0x86   :  { %344 = vsyncpa [#allocation3 + $0x1], 1 }
  0x87   :  { %345 = vsyncpa [#allocation4], 1 }
  0x88   :  { %347 = vsyncpa [#allocation4 + $0x1], 1 }

</bundles_post_ra>
